<compile_context>
chip_gen: v7x
topology: tpu7x:2x2x1
jax: 0.10.0
libtpu: 0.0.40
codegen_flags: <defaults>
</compile_context>

<pallas_src>
import functools

import jax
import jax.numpy as jnp
from jax.experimental import pallas as pl
from jax.experimental.pallas import tpu as pltpu


def _lin_reg_kernel(xT_ref, w_ref, b_ref, beta_ref, tau_ref, o_ref):
    # hidden^T = relu(W @ x^T + b)                    (m, TILE_N)  -- MXU + VPU
    h = jnp.dot(w_ref[...], xT_ref[...], preferred_element_type=jnp.float32)
    h = jnp.maximum(h + b_ref[...], 0.0)
    # out = beta . hidden + tau (per batch column)    (1, TILE_N)  -- lane-dense
    o_ref[...] = (jnp.sum(h * beta_ref[...], axis=0, keepdims=True)
                  + tau_ref[0, 0])


@functools.partial(jax.jit, static_argnames=("max_tile_n",))
def linear_regression_forward(x, weight, bias, beta, tau, *, max_tile_n=8192):
    """x: (N, p) f32; weight: (m, p) [torch nn.Linear layout]; bias: (m,);
    beta: (m,); tau: (1,).  Returns (N,) f32 == LinearRegressionModel.forward(x)."""
    x = x.astype(jnp.float32)
    N, p = x.shape
    m = weight.shape[0]

    # Batch is the lane axis of every block -> tile must be a multiple of 128.
    n128 = 128 * pl.cdiv(N, 128)
    tile_n = min(max_tile_n, n128)
    num_tiles = pl.cdiv(N, tile_n)
    n_pad = num_tiles * tile_n

    # Feature-major x (p, n_pad); transpose + pad fuse into one XLA relayout.
    # Zero-padded batch columns only ever reach dead output lanes that are
    # sliced off at the end (never read).
    xT = x.T
    if n_pad != N:
        xT = jnp.pad(xT, ((0, 0), (0, n_pad - N)))

    w = weight.astype(jnp.float32)                     # (m, p), PyTorch layout
    b_col = bias.astype(jnp.float32).reshape(m, 1)     # (m, 1)
    beta_col = beta.astype(jnp.float32).reshape(m, 1)  # (m, 1)
    tau_s = tau.astype(jnp.float32).reshape(1, 1)      # (1, 1) SMEM scalar

    out = pl.pallas_call(
        _lin_reg_kernel,
        out_shape=jax.ShapeDtypeStruct((1, n_pad), jnp.float32),
        grid=(num_tiles,),
        in_specs=[
            pl.BlockSpec((p, tile_n), lambda i: (0, i)),        # x^T tile (pipelined)
            pl.BlockSpec((m, p), lambda i: (0, 0)),             # W      (resident)
            pl.BlockSpec((m, 1), lambda i: (0, 0)),             # bias   (resident)
            pl.BlockSpec((m, 1), lambda i: (0, 0)),             # beta   (resident)
            pl.BlockSpec(memory_space=pltpu.MemorySpace.SMEM),  # tau scalar
        ],
        out_specs=pl.BlockSpec((1, tile_n), lambda i: (0, i)),
        compiler_params=pltpu.CompilerParams(
            dimension_semantics=("parallel",)),  # megacore sharding on v7x
    )(xT, w, b_col, beta_col, tau_s)

    return out[0, :N]


def _ref_forward(x, weight, bias, beta, tau):
    return jnp.maximum(x @ weight.T + bias, 0.0) @ beta + tau[0]


if __name__ == "__main__":
    p = 10
    m = p // 2  # 5, from the module's __init__

    key = jax.random.PRNGKey(0)
    kx, kw, kb, kbeta, ktau, kx2 = jax.random.split(key, 6)

    # Deterministic synthetic parameters (shapes match the torch module).
    weight = jax.random.normal(kw, (m, p), jnp.float32) * 0.3  # nn.Linear.weight
    bias = jax.random.normal(kb, (m,), jnp.float32) * 0.1      # nn.Linear.bias
    beta = jax.random.normal(kbeta, (m,), jnp.float32)         # self.beta
    tau = jax.random.normal(ktau, (1,), jnp.float32)           # self.tau

    # Small batch: single 128-lane tile, exercises the batch-padding path.
    N = 8
    x = jax.random.normal(kx, (N, p), jnp.float32)
    out = jax.block_until_ready(
        linear_regression_forward(x, weight, bias, beta, tau))
    ref = _ref_forward(x, weight, bias, beta, tau)
    assert out.shape == (N,)
    assert jnp.allclose(out, ref, atol=1e-5, rtol=1e-5)

    # Larger batch with a small tile -> multi-step grid (exercises the
    # pipelined grid and partial final tile).
    N2 = 2500
    x2 = jax.random.normal(kx2, (N2, p), jnp.float32)
    out2 = jax.block_until_ready(
        linear_regression_forward(x2, weight, bias, beta, tau, max_tile_n=512))
    ref2 = _ref_forward(x2, weight, bias, beta, tau)
    assert out2.shape == (N2,)
    assert jnp.allclose(out2, ref2, atol=1e-5, rtol=1e-5)

    # Same batch with the default (large) tile -> single grid step.
    out3 = jax.block_until_ready(
        linear_regression_forward(x2, weight, bias, beta, tau))
    assert jnp.allclose(out3, ref2, atol=1e-5, rtol=1e-5)

    # TODO(synk): getLogLikelihood / getLogPrior / getTransformedParameter are
    # training-time scalar log-densities, not part of forward(); left to plain JAX.
    print("KERNEL_OK")
</pallas_src>

<mosaic_0001>
module attributes {stable_mosaic.version = 11 : i64} {
  func.func @_lin_reg_kernel(%arg0: i32, %arg1: memref<10x128xf32, #tpu.memory_space<vmem>>, %arg2: memref<5x10xf32, #tpu.memory_space<vmem>>, %arg3: memref<5x1xf32, #tpu.memory_space<vmem>>, %arg4: memref<5x1xf32, #tpu.memory_space<vmem>>, %arg5: memref<1x1xf32, #tpu.memory_space<smem>>, %arg6: memref<1x128xf32, #tpu.memory_space<vmem>>) attributes {dimension_semantics = [#tpu.dimension_semantics<parallel>], iteration_bounds = array<i64: 1>, scalar_prefetch = 0 : i64, scratch_operands = 0 : i64, tpu.core_type = #tpu.core_type<tc>, window_params = [{transform_indices = @transform_0, window_bounds = array<i64: 10, 128>}, {pipeline_mode = #tpu.pipeline_mode<synchronous>, transform_indices = @transform_1, window_bounds = array<i64: 5, 10>}, {pipeline_mode = #tpu.pipeline_mode<synchronous>, transform_indices = @transform_2, window_bounds = array<i64: 5, 1>}, {pipeline_mode = #tpu.pipeline_mode<synchronous>, transform_indices = @transform_3, window_bounds = array<i64: 5, 1>}, {transform_indices = @transform_4, window_bounds = array<i64: 1, 1>}, {transform_indices = @transform_5, window_bounds = array<i64: 1, 128>}]} {
    %c0 = arith.constant 0 : index
    %c0_0 = arith.constant 0 : index
    %0 = vector.load %arg2[%c0, %c0_0] : memref<5x10xf32, #tpu.memory_space<vmem>>, vector<5x10xf32>
    %c0_1 = arith.constant 0 : index
    %c0_2 = arith.constant 0 : index
    %1 = vector.load %arg1[%c0_1, %c0_2] : memref<10x128xf32, #tpu.memory_space<vmem>>, vector<10x128xf32>
    %cst = arith.constant dense<0.000000e+00> : vector<5x128xf32>
    %2 = tpu.matmul %0, %1, %cst {dimension_numbers = #tpu.dot_dimension_numbers<[1], [0], [0], [1], [0, 0, 1, 1], [], []>} : vector<5x10xf32>, vector<10x128xf32>, vector<5x128xf32> -> vector<5x128xf32>
    %c0_3 = arith.constant 0 : index
    %c0_4 = arith.constant 0 : index
    %3 = vector.load %arg3[%c0_3, %c0_4] : memref<5x1xf32, #tpu.memory_space<vmem>>, vector<5x1xf32>
    %4 = vector.broadcast %3 : vector<5x1xf32> to vector<5x128xf32>
    %5 = arith.addf %2, %4 : vector<5x128xf32>
    %cst_5 = arith.constant 0.000000e+00 : f32
    %6 = vector.broadcast %cst_5 : f32 to vector<5x128xf32>
    %7 = arith.maximumf %5, %6 : vector<5x128xf32>
    %c0_6 = arith.constant 0 : index
    %c0_7 = arith.constant 0 : index
    %8 = vector.load %arg4[%c0_6, %c0_7] : memref<5x1xf32, #tpu.memory_space<vmem>>, vector<5x1xf32>
    %9 = vector.broadcast %8 : vector<5x1xf32> to vector<5x128xf32>
    %10 = arith.mulf %7, %9 : vector<5x128xf32>
    %cst_8 = arith.constant dense<0.000000e+00> : vector<128xf32>
    %11 = vector.multi_reduction <add>, %10, %cst_8 [0] : vector<5x128xf32> to vector<128xf32>
    %12 = vector.shape_cast %11 : vector<128xf32> to vector<1x128xf32>
    %c0_9 = arith.constant 0 : index
    %c0_10 = arith.constant 0 : index
    %13 = memref.load %arg5[%c0_9, %c0_10] : memref<1x1xf32, #tpu.memory_space<smem>>
    %14 = vector.broadcast %13 : f32 to vector<1x128xf32>
    %15 = arith.addf %12, %14 : vector<1x128xf32>
    %c0_11 = arith.constant 0 : index
    %c0_12 = arith.constant 0 : index
    %16 = vector.load %arg6[%c0_11, %c0_12] : memref<1x128xf32, #tpu.memory_space<vmem>>, vector<1x128xf32>
    tpu.vector_store %arg6[%c0_11, %c0_12], %15 {strides = array<i32>} : memref<1x128xf32, #tpu.memory_space<vmem>>, vector<1x128xf32>,
    return
  }
  func.func @transform_0(%arg0: i32) -> (i32, i32) {
    %c0_i32 = arith.constant 0 : i32
    %c0_i32_0 = arith.constant 0 : i32
    return %c0_i32, %arg0 : i32, i32
  }
  func.func @transform_1(%arg0: i32) -> (i32, i32) {
    %c0_i32 = arith.constant 0 : i32
    %c0_i32_0 = arith.constant 0 : i32
    %c0_i32_1 = arith.constant 0 : i32
    return %c0_i32, %c0_i32_0 : i32, i32
  }
  func.func @transform_2(%arg0: i32) -> (i32, i32) {
    %c0_i32 = arith.constant 0 : i32
    %c0_i32_0 = arith.constant 0 : i32
    %c0_i32_1 = arith.constant 0 : i32
    return %c0_i32, %c0_i32_0 : i32, i32
  }
  func.func @transform_3(%arg0: i32) -> (i32, i32) {
    %c0_i32 = arith.constant 0 : i32
    %c0_i32_0 = arith.constant 0 : i32
    %c0_i32_1 = arith.constant 0 : i32
    return %c0_i32, %c0_i32_0 : i32, i32
  }
  func.func @transform_4(%arg0: i32) -> (i32, i32) {
    %c0_i32 = arith.constant 0 : i32
    %c0_i32_0 = arith.constant 0 : i32
    %c0_i32_1 = arith.constant 0 : i32
    return %c0_i32, %c0_i32_0 : i32, i32
  }
  func.func @transform_5(%arg0: i32) -> (i32, i32) {
    %c0_i32 = arith.constant 0 : i32
    %c0_i32_0 = arith.constant 0 : i32
    return %c0_i32, %arg0 : i32, i32
  }
}

</mosaic_0001>

<bundles_post_ra>
// kernel: linear_regression_forward.1
= control target key start
LH: loop header
LB: loop body
LE: loop exit
PB: predicated region body
PF: predicated region fallthrough
CT: control target
= control target key end

     0   :  { %vm34_vm0 = vcmask 1041408   ;;  %v154_v0 = vmov 0.0|0.0   ;;  %vm155_vm1 = vmmov 1   ;;  %vm156_vm3 = vmmov 0   ;;  %s210_s0 = inlined_call_operand.vmem [shape: f32[10,128], index: 0, kind: input, shape index: {}]   ;;  %s211_s2 = inlined_call_operand.vmem [shape: f32[5,1], index: 2, kind: input, shape index: {}]   ;;  %s212_s1 = inlined_call_operand.vmem [shape: f32[5,10], index: 1, kind: input, shape index: {}]   ;;  %s213_s3 = inlined_call_operand.vmem [shape: f32[5,1], index: 3, kind: input, shape index: {}]   ;;  %s214_s4 = inlined_call_operand.<no memory space> [shape: f32[1,1], index: 4, kind: input, shape index: {}]   ;;  %s215_s5 = inlined_call_operand.vmem [shape: f32[1,128], index: 5, kind: output, shape index: {}]  }
   0x1   :  { %144 = vmatprep.subr.bf16.mxu0 %v154_v0  ;;  %v22_v1 = vld [vmem:[%s210_s0] sm:$0xff]  ;;  %v23_v2 = vld [vmem:[%s210_s0 + $0x8] sm:$0x3]  ;;  %vm146_vm2 = vmpackc.low %vm34_vm0, %vm155_vm1  ;;  %v157_v4 = vmov 0.0   ;;  %v158_v5 = vmov 0   ;;  %vm30_vm4 = vcmask 80896   ;;  %v125_v22 = vstv %s214_s4 }
   0x2   :  { %v145_v3 = vpack.c.bf16 %v23_v2, %v22_v1  ;;  %141 = vmatprep.mubr.msk.f32.mxu0 %vm156_vm3, %v157_v4  ;;  %153 = vset.pattern.permute.xlu0 %v158_v5  ;;  %v24_v6 = vld [vmem:[%s211_s2] sm:$0x1f]  ;;  %vm116_vm5 = vcmask 1044480  }
   0x3   :  { %27 = vperm.xlu0 %153, %v24_v6   ;;  %v21_v7 = vld [vmem:[%s212_s1] sm:$0x1f] }
   0x4   :  { %147 = vmatpush3.bf16.msk.msra.mxu0 %vm146_vm2, %v145_v3  ;;  %v109_v8 = vld [vmem:[%s213_s3] sm:$0x1f] }
   0x7   :  { %142 = vmatmul.mubr.msk.f32.vlgmr.msra.gmra.mrb[0].mxu0 %vm30_vm4, %v21_v7  ;;  %112 = vperm.xlu0 %153, %v109_v8  }
  0x82   :  { %v28_v9 = vpop.permute.xlu0 %27 }
  0x86   :  { %v113_v14 = vpop.permute.xlu0 %112 }
  0xda   :  { %v104_v10 = vpop.f32.mrb[0].mxu0 }
  0xdb   :  { %v105_v11 = vadd.f32 %v104_v10, %v28_v9  ;;  %v143_v12 = vpop.f32.mrb[1].mxu0 }
  0xdd   :  { %v108_v13 = vmax.f32 %v105_v11, 0.0 }
  0xdf   :  { %v115_v15 = vmul.f32 %v113_v14, %v108_v13 }
  0xe1   :  { %v117_v16 = vsel %vm116_vm5, %v115_v15, 0.0 }
  0xe2   :  { %v118_v17 = vrot.slane %v117_v16, 4 }
  0xe4   :  { %v119_v18 = vadd.f32 %v118_v17, %v117_v16 }
  0xe6   :  { %v120_v19 = vrot.slane %v119_v18, 2 }
  0xe8   :  { %v121_v20 = vadd.f32 %v120_v19, %v119_v18 }
  0xea   :  { %v122_v21 = vrot.slane %v121_v20, 1 }
  0xec   :  { %v123_v23 = vadd.f32 %v122_v21, %v121_v20 }
  0xee   :  { %v126_v24 = vadd.f32 %v125_v22, %v123_v23 }
  0xf0   :  { %127 = vst [vmem:[%s215_s5] sm:$0x1] %v126_v24 }

</bundles_post_ra>
